<compile_context>
chip_gen: v7x
topology: tpu7x:2x2x1
jax: 0.10.0
libtpu: 0.0.40
codegen_flags: <defaults>
</compile_context>

<pallas_src>
import functools

import jax
import jax.numpy as jnp
from jax import lax
from jax.experimental import pallas as pl
from jax.experimental.pallas import tpu as pltpu


def _focal_loss_kernel(x_ref, labels_ref, alpha_ref, out_ref, acc_ref, *,
                       gamma, n_total, tile_cols, inner_tiles):
    o = pl.program_id(0)          # parallel group
    i = pl.program_id(1)          # reduction step within the group

    @pl.when(i == 0)
    def _init():
        acc_ref[...] = jnp.zeros_like(acc_ref)

    x = x_ref[...].astype(jnp.float32)             # (C, T) logits, class on sublanes
    lab = labels_ref[...]                          # (1, T) int32
    alpha = alpha_ref[...].astype(jnp.float32)     # (C, 1)

    # log-sum-exp over the class axis (only C sublane rows -> cheap combine)
    m = jnp.max(x, axis=0, keepdims=True)                      # (1, T)
    denom = jnp.sum(jnp.exp(x - m), axis=0, keepdims=True)     # (1, T)

    # gather-by-label as a one-hot masked reduce over the C sublane rows
    cls = lax.broadcasted_iota(jnp.int32, x.shape, 0)          # (C, T)
    onehot = (cls == lab).astype(jnp.float32)                  # (C, T)
    x_t = jnp.sum(x * onehot, axis=0, keepdims=True)           # (1, T) logit at label
    a_t = jnp.sum(alpha * onehot, axis=0, keepdims=True)       # (1, T) alpha at label

    # log-softmax at the label directly (no full softmax, no (C,T) divide)
    logp_t = (x_t - m) - jnp.log(denom)                        # (1, T)
    one_minus = 1.0 - jnp.exp(logp_t)                          # 1 - p_t
    gamma_f = float(gamma)
    if gamma_f.is_integer():
        focal = lax.integer_pow(one_minus, int(gamma_f))
    else:
        focal = jnp.power(one_minus, gamma_f)
    loss = -a_t * focal * logp_t                               # (1, T)

    # mask out padded columns (tail tile + overshoot tiles of the grid split);
    # use the UNclamped tile id so clamped (re-read) tiles contribute zero.
    tile_id = o * inner_tiles + i
    col = tile_id * tile_cols + lax.broadcasted_iota(jnp.int32, loss.shape, 1)
    acc_ref[...] += jnp.where(col < n_total, loss, 0.0)

    @pl.when(i == inner_tiles - 1)
    def _finalize():
        out_ref[...] = jnp.broadcast_to(jnp.sum(acc_ref[...]), out_ref.shape)


def focal_loss(inputs, labels, *, alpha=0.25, gamma=2, num_classes=2,
               size_average=True, tile_n=65536, num_parallel=2):
    """JAX/Pallas equivalent of FocalLoss.forward for 2-D `inputs` (N, C)."""
    n, c = inputs.shape
    assert c == num_classes

    # __init__ parameter construction (deterministic, in-script):
    if isinstance(alpha, (list, tuple)):
        assert len(alpha) == num_classes
        alpha_vec = jnp.asarray(alpha, jnp.float32)
    else:
        assert alpha < 1
        alpha_vec = jnp.concatenate(
            [jnp.full((1,), alpha, jnp.float32),
             jnp.full((num_classes - 1,), 1.0 - alpha, jnp.float32)])

    # Lane-dense layout: batch -> lanes, class -> sublanes.  No f32 pre-cast of
    # the logits in the wrapper; the kernel upcasts in-register.
    x_cn = inputs.T                                      # (C, N), caller dtype
    labels_1n = labels.reshape(1, n).astype(jnp.int32)   # (1, N)
    alpha_c1 = alpha_vec.reshape(num_classes, 1)         # (C, 1)

    # Tile sizing: keep the double-buffered (C, tile) + (1, tile) blocks and the
    # scratch comfortably inside VMEM on every generation (v7x: 64 MiB physical /
    # 32 MiB default scoped; v5e: 16 MiB default scoped).  ~4 MiB live per step.
    bytes_per_col = 4 * (num_classes + 2)    # f32 logits rows + int32 label + f32 scratch
    max_tile = max(128, ((4 * 1024 * 1024) // bytes_per_col) // 128 * 128)
    tile = min(int(tile_n), max_tile)
    if n <= tile:
        tile = n                              # single full-width block
    num_tiles = pl.cdiv(n, tile)

    groups = max(1, min(int(num_parallel), num_tiles))   # outer 'parallel' axis (v7x 2 TCs)
    inner_tiles = pl.cdiv(num_tiles, groups)

    def data_map(o, i):
        # Overshoot tiles (o*inner_tiles + i >= num_tiles) are clamped to the
        # last real tile; their contribution is masked to zero in the kernel.
        return (0, jnp.minimum(o * inner_tiles + i, num_tiles - 1))

    kernel = functools.partial(
        _focal_loss_kernel, gamma=float(gamma), n_total=n,
        tile_cols=tile, inner_tiles=inner_tiles)

    partials = pl.pallas_call(
        kernel,
        out_shape=jax.ShapeDtypeStruct((groups, 1, 128), jnp.float32),
        grid=(groups, inner_tiles),
        in_specs=[
            pl.BlockSpec((num_classes, tile), data_map),          # logits (C, N)
            pl.BlockSpec((1, tile), data_map),                    # labels (1, N)
            pl.BlockSpec((num_classes, 1), lambda o, i: (0, 0)),  # alpha  (C, 1)
        ],
        out_specs=pl.BlockSpec((1, 1, 128), lambda o, i: (o, 0, 0)),
        scratch_shapes=[pltpu.VMEM((1, tile), jnp.float32)],
        compiler_params=pltpu.CompilerParams(
            dimension_semantics=("parallel", "arbitrary")),
    )(x_cn, labels_1n, alpha_c1)

    total = jnp.sum(partials[:, 0, 0])
    return total / n if size_average else total


def _reference(inputs, labels, alpha=0.25, gamma=2, num_classes=2,
               size_average=True):
    """Pure-JAX reference mirroring the PyTorch code path."""
    alpha_vec = jnp.concatenate(
        [jnp.full((1,), alpha, jnp.float32),
         jnp.full((num_classes - 1,), 1.0 - alpha, jnp.float32)])
    p = jax.nn.softmax(inputs.astype(jnp.float32), axis=-1)
    logp = jnp.log(p)
    idx = labels.astype(jnp.int32)
    p_t = jnp.take_along_axis(p, idx[:, None], axis=1)[:, 0]
    logp_t = jnp.take_along_axis(logp, idx[:, None], axis=1)[:, 0]
    a_t = alpha_vec[idx]
    loss = -a_t * jnp.power(1.0 - p_t, gamma) * logp_t
    return jnp.mean(loss) if size_average else jnp.sum(loss)


if __name__ == "__main__":
    key = jax.random.PRNGKey(0)
    k1, k2, k3, k4 = jax.random.split(key, 4)

    # Case 1: module-default small shapes (batch=8, num_classes=2), single tile.
    N1, C1 = 8, 2
    logits1 = jax.random.normal(k1, (N1, C1), dtype=jnp.float32)
    labels1 = jax.random.randint(k2, (N1,), 0, C1, dtype=jnp.int32)
    out1 = jax.block_until_ready(
        focal_loss(logits1, labels1, alpha=0.25, gamma=2, num_classes=C1,
                   size_average=True))
    ref1 = _reference(logits1, labels1, 0.25, 2, C1, True)
    assert jnp.allclose(out1, ref1, rtol=1e-5, atol=1e-5), (out1, ref1)

    # Case 2: exercises the tiled + parallel-grid path (grid=(2,2), tail masking,
    # overshoot-tile clamping, size_average=False).
    N2, C2 = 300, 2
    logits2 = jax.random.normal(k3, (N2, C2), dtype=jnp.float32)
    labels2 = jax.random.randint(k4, (N2,), 0, C2, dtype=jnp.int32)
    out2 = jax.block_until_ready(
        focal_loss(logits2, labels2, alpha=0.25, gamma=2, num_classes=C2,
                   size_average=False, tile_n=128, num_parallel=2))
    ref2 = _reference(logits2, labels2, 0.25, 2, C2, False)
    assert jnp.allclose(out2, ref2, rtol=1e-4, atol=1e-4), (out2, ref2)

    print("KERNEL_OK")
</pallas_src>

<mosaic_0001>
module attributes {stable_mosaic.version = 11 : i64} {
  func.func @_focal_loss_kernel(%arg0: i32, %arg1: i32, %arg2: memref<2x8xf32, #tpu.memory_space<vmem>>, %arg3: memref<1x8xi32, #tpu.memory_space<vmem>>, %arg4: memref<2x1xf32, #tpu.memory_space<vmem>>, %arg5: memref<1x1x128xf32, #tpu.memory_space<vmem>>, %arg6: memref<1x8xf32, #tpu.memory_space<vmem>>) attributes {dimension_semantics = [#tpu.dimension_semantics<parallel>, #tpu.dimension_semantics<arbitrary>], iteration_bounds = array<i64: 1, 1>, scalar_prefetch = 0 : i64, scratch_operands = 1 : i64, tpu.core_type = #tpu.core_type<tc>, window_params = [{transform_indices = @transform_0, window_bounds = array<i64: 2, 8>}, {transform_indices = @transform_1, window_bounds = array<i64: 1, 8>}, {pipeline_mode = #tpu.pipeline_mode<synchronous>, transform_indices = @transform_2, window_bounds = array<i64: 2, 1>}, {transform_indices = @transform_3, window_bounds = array<i64: 1, 1, 128>}]} {
    %c0_i32 = arith.constant 0 : i32
    %0 = arith.cmpi eq, %arg1, %c0_i32 : i32
    %1 = arith.extui %0 : i1 to i32
    %c0_i32_0 = arith.constant 0 : i32
    %2 = arith.cmpi ne, %1, %c0_i32_0 : i32
    scf.if %2 {
      %cst_19 = arith.constant 0.000000e+00 : f32
      %52 = vector.broadcast %cst_19 : f32 to vector<1x8xf32>
      %c0_20 = arith.constant 0 : index
      %c0_21 = arith.constant 0 : index
      %53 = vector.load %arg6[%c0_20, %c0_21] : memref<1x8xf32, #tpu.memory_space<vmem>>, vector<1x8xf32>
      tpu.vector_store %arg6[%c0_20, %c0_21], %52 {strides = array<i32>} : memref<1x8xf32, #tpu.memory_space<vmem>>, vector<1x8xf32>,
    } else {
    }
    %c0 = arith.constant 0 : index
    %c0_1 = arith.constant 0 : index
    %3 = vector.load %arg2[%c0, %c0_1] : memref<2x8xf32, #tpu.memory_space<vmem>>, vector<2x8xf32>
    %c0_2 = arith.constant 0 : index
    %c0_3 = arith.constant 0 : index
    %4 = vector.load %arg3[%c0_2, %c0_3] : memref<1x8xi32, #tpu.memory_space<vmem>>, vector<1x8xi32>
    %c0_4 = arith.constant 0 : index
    %c0_5 = arith.constant 0 : index
    %5 = vector.load %arg4[%c0_4, %c0_5] : memref<2x1xf32, #tpu.memory_space<vmem>>, vector<2x1xf32>
    %cst = arith.constant dense<0xFF800000> : vector<8xf32>
    %6 = vector.multi_reduction <maximumf>, %3, %cst [0] : vector<2x8xf32> to vector<8xf32>
    %7 = vector.shape_cast %6 : vector<8xf32> to vector<1x8xf32>
    %8 = vector.broadcast %7 : vector<1x8xf32> to vector<2x8xf32>
    %9 = arith.subf %3, %8 : vector<2x8xf32>
    %10 = math.exp %9 : vector<2x8xf32>
    %cst_6 = arith.constant dense<0.000000e+00> : vector<8xf32>
    %11 = vector.multi_reduction <add>, %10, %cst_6 [0] : vector<2x8xf32> to vector<8xf32>
    %12 = vector.shape_cast %11 : vector<8xf32> to vector<1x8xf32>
    %13 = tpu.iota {dimensions = array<i32: 0>} : vector<2x8xi32>
    %14 = vector.broadcast %4 : vector<1x8xi32> to vector<2x8xi32>
    %15 = arith.cmpi eq, %13, %14 : vector<2x8xi32>
    %16 = arith.extui %15 : vector<2x8xi1> to vector<2x8xi32>
    %17 = arith.sitofp %16 : vector<2x8xi32> to vector<2x8xf32>
    %18 = arith.mulf %3, %17 : vector<2x8xf32>
    %cst_7 = arith.constant dense<0.000000e+00> : vector<8xf32>
    %19 = vector.multi_reduction <add>, %18, %cst_7 [0] : vector<2x8xf32> to vector<8xf32>
    %20 = vector.shape_cast %19 : vector<8xf32> to vector<1x8xf32>
    %21 = vector.broadcast %5 : vector<2x1xf32> to vector<2x8xf32>
    %22 = arith.mulf %21, %17 : vector<2x8xf32>
    %cst_8 = arith.constant dense<0.000000e+00> : vector<8xf32>
    %23 = vector.multi_reduction <add>, %22, %cst_8 [0] : vector<2x8xf32> to vector<8xf32>
    %24 = vector.shape_cast %23 : vector<8xf32> to vector<1x8xf32>
    %25 = arith.subf %20, %7 : vector<1x8xf32>
    %26 = math.log %12 : vector<1x8xf32>
    %27 = arith.subf %25, %26 : vector<1x8xf32>
    %28 = math.exp %27 : vector<1x8xf32>
    %cst_9 = arith.constant 1.000000e+00 : f32
    %29 = vector.broadcast %cst_9 : f32 to vector<1x8xf32>
    %30 = arith.subf %29, %28 : vector<1x8xf32>
    %31 = arith.mulf %30, %30 : vector<1x8xf32>
    %cst_10 = arith.constant 0.000000e+00 : f32
    %32 = vector.broadcast %cst_10 : f32 to vector<1x8xf32>
    %33 = arith.subf %32, %24 : vector<1x8xf32>
    %34 = arith.mulf %33, %31 : vector<1x8xf32>
    %35 = arith.mulf %34, %27 : vector<1x8xf32>
    %c1_i32 = arith.constant 1 : i32
    %36 = arith.muli %arg0, %c1_i32 : i32
    %37 = arith.addi %36, %arg1 : i32
    %c8_i32 = arith.constant 8 : i32
    %38 = arith.muli %37, %c8_i32 : i32
    %39 = tpu.iota {dimensions = array<i32: 1>} : vector<1x8xi32>
    %40 = vector.broadcast %38 : i32 to vector<1x8xi32>
    %41 = arith.addi %40, %39 : vector<1x8xi32>
    %c0_11 = arith.constant 0 : index
    %c0_12 = arith.constant 0 : index
    %42 = vector.load %arg6[%c0_11, %c0_12] : memref<1x8xf32, #tpu.memory_space<vmem>>, vector<1x8xf32>
    %c8_i32_13 = arith.constant 8 : i32
    %43 = vector.broadcast %c8_i32_13 : i32 to vector<1x8xi32>
    %44 = arith.cmpi slt, %41, %43 : vector<1x8xi32>
    %cst_14 = arith.constant 0.000000e+00 : f32
    %45 = vector.broadcast %cst_14 : f32 to vector<1x8xf32>
    %46 = arith.select %44, %35, %45 : vector<1x8xi1>, vector<1x8xf32>
    %47 = arith.addf %42, %46 : vector<1x8xf32>
    %c0_15 = arith.constant 0 : index
    %c0_16 = arith.constant 0 : index
    %48 = vector.load %arg6[%c0_15, %c0_16] : memref<1x8xf32, #tpu.memory_space<vmem>>, vector<1x8xf32>
    tpu.vector_store %arg6[%c0_15, %c0_16], %47 {strides = array<i32>} : memref<1x8xf32, #tpu.memory_space<vmem>>, vector<1x8xf32>,
    %c0_i32_17 = arith.constant 0 : i32
    %49 = arith.cmpi eq, %arg1, %c0_i32_17 : i32
    %50 = arith.extui %49 : i1 to i32
    %c0_i32_18 = arith.constant 0 : i32
    %51 = arith.cmpi ne, %50, %c0_i32_18 : i32
    scf.if %51 {
      %c0_19 = arith.constant 0 : index
      %c0_20 = arith.constant 0 : index
      %52 = vector.load %arg6[%c0_19, %c0_20] : memref<1x8xf32, #tpu.memory_space<vmem>>, vector<1x8xf32>
      %53 = vector.shape_cast %52 : vector<1x8xf32> to vector<1x1x8xf32>
      %cst_21 = arith.constant dense<0.000000e+00> : vector<1xf32>
      %54 = vector.multi_reduction <add>, %53, %cst_21 [1, 2] : vector<1x1x8xf32> to vector<1xf32>
      %55 = vector.shape_cast %54 : vector<1xf32> to vector<1x1x1xf32>
      %56 = vector.extract %55[0, 0, 0] : f32 from vector<1x1x1xf32>
      %57 = vector.broadcast %56 : f32 to vector<1x1x128xf32>
      %c0_22 = arith.constant 0 : index
      %c0_23 = arith.constant 0 : index
      %c0_24 = arith.constant 0 : index
      %58 = vector.load %arg5[%c0_22, %c0_23, %c0_24] : memref<1x1x128xf32, #tpu.memory_space<vmem>>, vector<1x1x128xf32>
      tpu.vector_store %arg5[%c0_22, %c0_23, %c0_24], %57 {strides = array<i32>} : memref<1x1x128xf32, #tpu.memory_space<vmem>>, vector<1x1x128xf32>,
    } else {
    }
    return
  }
  func.func @transform_0(%arg0: i32, %arg1: i32) -> (i32, i32) {
    %c1_i32 = arith.constant 1 : i32
    %0 = arith.muli %arg0, %c1_i32 : i32
    %1 = arith.addi %0, %arg1 : i32
    %c0_i32 = arith.constant 0 : i32
    %2 = arith.minsi %1, %c0_i32 : i32
    %c0_i32_0 = arith.constant 0 : i32
    %c0_i32_1 = arith.constant 0 : i32
    return %c0_i32_0, %2 : i32, i32
  }
  func.func @transform_1(%arg0: i32, %arg1: i32) -> (i32, i32) {
    %c1_i32 = arith.constant 1 : i32
    %0 = arith.muli %arg0, %c1_i32 : i32
    %1 = arith.addi %0, %arg1 : i32
    %c0_i32 = arith.constant 0 : i32
    %2 = arith.minsi %1, %c0_i32 : i32
    %c0_i32_0 = arith.constant 0 : i32
    %c0_i32_1 = arith.constant 0 : i32
    return %c0_i32_0, %2 : i32, i32
  }
  func.func @transform_2(%arg0: i32, %arg1: i32) -> (i32, i32) {
    %c0_i32 = arith.constant 0 : i32
    %c0_i32_0 = arith.constant 0 : i32
    %c0_i32_1 = arith.constant 0 : i32
    return %c0_i32, %c0_i32_0 : i32, i32
  }
  func.func @transform_3(%arg0: i32, %arg1: i32) -> (i32, i32, i32) {
    %c0_i32 = arith.constant 0 : i32
    %c0_i32_0 = arith.constant 0 : i32
    %c0_i32_1 = arith.constant 0 : i32
    return %arg0, %c0_i32, %c0_i32_0 : i32, i32, i32
  }
}

</mosaic_0001>

<bundles_post_ra>
// kernel: tpu_custom_call.1
= control target key start
LH: loop header
LB: loop body
LE: loop exit
PB: predicated region body
PF: predicated region fallthrough
CT: control target
= control target key end

     0   :  { %v223_v1 = vmov 0   ;;  %s274_s0 = inlined_call_operand.vmem [shape: f32[2,8], index: 0, kind: input, shape index: {}]   ;;  %s275_s1 = inlined_call_operand.vmem [shape: s32[1,8], index: 1, kind: input, shape index: {}]   ;;  %s276_s2 = inlined_call_operand.vmem [shape: f32[2,1], index: 2, kind: input, shape index: {}]   ;;  %s277_s3 = inlined_call_operand.hbm [shape: f32[1,1,128], index: 3, kind: output, shape index: {}]  }
   0x1   :  { %v74_v0 = vld [vmem:[%s276_s2] sm:$0x3]  ;;  %192 = vset.pattern.permute.xlu0 %v223_v1 }
   0x2   :  { %8 = vsyncpa [#allocation4], 0  ;;  %112 = vperm.xlu0 %192, %v74_v0   ;;  %vm70_vm0 = vcmask 57344   ;;  %v224_v2 = vmov 0.0   ;;  %vm75_vm1 = vcmask 58368   ;;  %v93_v13 = vlaneseq }
   0x3   :  { %71 = vst.msk [vmem:[#allocation2] sm:$0x1] %vm70_vm0, %v224_v2  ;;  %v72_v3 = vld [vmem:[%s274_s0] sm:$0x3]  ;;  %s225_s0 = smov [#allocation3]  }
   0x4   :  { %v76_v4 = vsel %vm75_vm1, %v72_v3, -inf  ;;  %v94_v15 = vshrl.u32 %v93_v13, 7  ;;  %v185_v16 = vld [vmem:[%s275_s1] ss:$0 sm:$0xff]  ;;  %v137_v50 = vand.u32 127, %v93_v13  ;;  %s168_s1 = sshll.u32 %s225_s0, 4  ;;  %s169_s1 = int_to_ptr.vmem [resolvable:$true] %s168_s1 }
   0x5   :  { %v77_v5 = vrot.slane %v76_v4, 4  ;;  %s199_s18 = scalar_lea.vmem %s169_s1, 16  ;;  %s203_s19 = scalar_lea.vmem %s169_s1, 32 }
   0x6   :  { %vm99_vm2 = vcmp.eq.s32.totalorder %v94_v15, %v185_v16  ;;  %vm141_vm3 = vcmp.lt.s32.totalorder %v137_v50, 8  ;;  %p200_p0 = scmp.ne.s32.totalorder %s169_s1, %s199_s18  ;;  %p204_p1 = scmp.lt.s32.totalorder %s169_s1, %s169_s1 }
   0x7   :  { %v78_v6 = vmax.f32 %v76_v4, %v77_v5  ;;  %v186_v19 = vsel %vm99_vm2, 1.0, %v224_v2  ;;  %p205_p2 = scmp.lt.s32.totalorder %s203_s19, %s199_s18 }
   0x8   :  { %v102_v21 = vmul.f32 %v186_v19, %v72_v3 }
   0x9   :  { %v79_v7 = vrot.slane %v78_v6, 2  ;;  %p206_p3 = por %p205_p2, %p204_p1 }
   0xa   :  { %v103_v23 = vsel %vm75_vm1, %v102_v21, 0.0  ;;  %v140_v54 = vld [vmem:[#allocation2] sm:$0x1] }
   0xb   :  { %v80_v8 = vmax.f32 %v78_v6, %v79_v7  ;;  %v104_v25 = vrot.slane %v103_v23, 4  ;;  %p207_p4 = pnand %p206_p3, %p200_p0 }
   0xd   :  { %v81_v9 = vrot.slane %v80_v8, 1  ;;  %v105_v27 = vadd.f32 %v104_v25, %v103_v23 }
   0xf   :  { %v82_v10 = vmax.f32 %v80_v8, %v81_v9  ;;  %v106_v29 = vrot.slane %v105_v27, 2 }
  0x11   :  { %v83_v11 = vsub.f32 %v72_v3, %v82_v10  ;;  %v107_v30 = vadd.f32 %v106_v29, %v105_v27 }
  0x13   :  { %v84_v12 = vmul.f32 1.442695, %v83_v11  ;;  %v108_v31 = vrot.slane %v107_v30, 1 }
  0x15   :  { %193 = vpow2.f32 %v84_v12  ;;  %v109_v32 = vadd.f32 %v108_v31, %v107_v30 }
  0x17   :  { %v123_v34 = vsub.f32 %v109_v32, %v82_v10 }
  0x1f   :  { %v194_v14 = vpop.eup %193 }
  0x20   :  { %v86_v17 = vsel %vm75_vm1, %v194_v14, 0.0 }
  0x21   :  { %v87_v18 = vrot.slane %v86_v17, 4 }
  0x23   :  { %v88_v20 = vadd.f32 %v87_v18, %v86_v17 }
  0x25   :  { %v89_v22 = vrot.slane %v88_v20, 2 }
  0x27   :  { %v90_v24 = vadd.f32 %v89_v22, %v88_v20 }
  0x29   :  { %v91_v26 = vrot.slane %v90_v24, 1 }
  0x2b   :  { %v92_v28 = vadd.f32 %v91_v26, %v90_v24 }
  0x2d   :  { %195 = vlog2.f32 %v92_v28 }
  0x37   :  { %v196_v33 = vpop.eup %195 }
  0x38   :  { %v125_v35 = vmul.f32 0.6931472, %v196_v33 }
  0x3a   :  { %v126_v36 = vsub.f32 %v123_v34, %v125_v35 }
  0x3c   :  { %v127_v37 = vmul.f32 1.442695, %v126_v36 }
  0x3e   :  { %197 = vpow2.f32 %v127_v37 }
  0x48   :  { %v198_v43 = vpop.eup %197 }
  0x49   :  { %v129_v46 = vsub.f32 1.0, %v198_v43 }
  0x4b   :  { %v130_v49 = vmul.f32 %v129_v46, %v129_v46 }
  0x81   :  { %v113_v38 = vpop.permute.xlu0 %112 }
  0x82   :  { %v115_v39 = vmul.f32 %v186_v19, %v113_v38 }
  0x84   :  { %v116_v40 = vsel %vm75_vm1, %v115_v39, 0.0 }
  0x85   :  { %v117_v41 = vrot.slane %v116_v40, 4 }
  0x87   :  { %v118_v42 = vadd.f32 %v117_v41, %v116_v40 }
  0x89   :  { %v119_v44 = vrot.slane %v118_v42, 2 }
  0x8b   :  { %v120_v45 = vadd.f32 %v119_v44, %v118_v42 }
  0x8d   :  { %v121_v47 = vrot.slane %v120_v45, 1 }
  0x8f   :  { %v122_v48 = vadd.f32 %v121_v47, %v120_v45 }
  0x91   :  { %v131_v51 = vsub.f32 0.0, %v122_v48 }
  0x93   :  { %v132_v52 = vmul.f32 %v131_v51, %v130_v49 }
  0x95   :  { %v133_v53 = vmul.f32 %v132_v52, %v126_v36 }
  0x97   :  { %v142_v55 = vsel %vm141_vm3, %v133_v53, 0.0 }
  0x98   :  { %v143_v56 = vadd.f32 %v142_v55, %v140_v54 }
  0x9a   :  { %145 = vst.msk [vmem:[#allocation2] sm:$0x1] %vm70_vm0, %v143_v56 }
  0xa1   :  { %v149_v57 = vld [vmem:[#allocation2] sm:$0x1] }
  0xa2   :  { %v150_v58 = vsel %vm70_vm0, %v149_v57, 0.0 }
  0xa3   :  { %151 = vadd.xlane.f32.xlu0 %v150_v58 }
 0x130   :  { %v152_v59 = vpop.xlane.xlu0 %151 }
 0x131   :  { %v153_v60 = vrot.slane %v152_v59, 4 }
 0x133   :  { %v154_v61 = vadd.f32 %v153_v60, %v152_v59 }
 0x135   :  { %v155_v62 = vrot.slane %v154_v61, 2 }
 0x137   :  { %v156_v63 = vadd.f32 %v155_v62, %v154_v61 }
 0x139   :  { %v157_v0 = vrot.slane %v156_v63, 1 }
 0x13b   :  { %v158_v1 = vadd.f32 %v157_v0, %v156_v63 }
 0x13d   :  { %187 = vpush %v158_v1 }
 0x16e   :  { %s188_s17 = spop %187 }
 0x16f   :  { %v160_v2 = vstv %s188_s17 }
 0x170   :  { %161 = vst [vmem:[#allocation3] sm:$0x1] %v160_v2 }
 0x171   :  { %210 = shalt.err (!%p207_p4)
}
 0x172   :  { %s211_s22 = scalar_lea.hbm %s277_s3, 16 }
 0x173   :  { %p212_p5 = scmp.ne.s32.totalorder %s277_s3, %s211_s22  ;;  %p215_p6 = scmp.lt.u32.totalorder %s211_s22, %s277_s3 }
 0x175   :  { %p217_p7 = pnand %p215_p6, %p212_p5 }
 0x177   :  { %220 = shalt.err (!%p217_p7)
}
 0x178   :  { %171 = dma.vmem_to_hbm [thread:$0]  %s169_s1, 16, %s277_s3, [#allocation4]  }
 0x179   :  { %221 = dma.done.wait [#allocation4], 16  }
 0x17a   :  { %222 = vsyncadd [#allocation4], 4294967280 }
 0x17b   :  { %175 = vsyncpa [#allocation4], 1 }

</bundles_post_ra>
